<compile_context>
chip_gen: v7x
topology: tpu7x:2x2x1
jax: 0.10.0
libtpu: 0.0.40
codegen_flags: <defaults>
</compile_context>

<pallas_src>
import jax
import jax.numpy as jnp
from jax import lax
from jax.experimental import pallas as pl
from jax.experimental.pallas import tpu as pltpu


# ---------------------------------------------------------------------------
# Channel-space weight folding:  G (C, C)  ->  M (C, C),  out = x + M @ x.
# Used both inside the fused kernel and (vmapped) in plain XLA for the
# streaming path.  Uses only dot_general dimension-number combos that lower
# cleanly in Mosaic; no explicit transpose of any operand is materialized.
# ---------------------------------------------------------------------------
def _fold_weights_to_m(g, wr, wp, w1, b1_row, w2, b2_col, we):
    f32 = jnp.float32
    g = g.astype(f32)
    wr, wp, w1, w2, we = (a.astype(f32) for a in (wr, wp, w1, w2, we))
    b1_row = b1_row.astype(f32)                                 # (1, C)
    b2_col = b2_col.astype(f32)                                 # (C4, 1)
    # V^T  = Wp @ G @ Wr^T                                      (C4, C)
    t = jnp.dot(wp, g, preferred_element_type=f32)
    vt = lax.dot_general(t, wr, (((1,), (1,)), ((), ())),
                         preferred_element_type=f32)
    # V1^T = V^T @ W1^T + b1   (bias broadcast along lanes)     (C4, C)
    v1t = lax.dot_general(vt, w1, (((1,), (1,)), ((), ())),
                          preferred_element_type=f32) + b1_row
    # V2^T = W2 @ V1^T + b2    (kept in (C4, C) orientation)    (C4, C)
    v2t = jnp.dot(w2, v1t, preferred_element_type=f32) + b2_col
    # M = (We @ V2) @ Wp — orientation change folded into contraction dims.
    q = lax.dot_general(we, v2t, (((1,), (1,)), ((), ())),
                        preferred_element_type=f32)             # (C, C4)
    return jnp.dot(q, wp, preferred_element_type=f32)           # (C, C)


# ---------------------------------------------------------------------------
# Fused kernel: one batch element fully resident in VMEM.
# ---------------------------------------------------------------------------
def _glore_fused_kernel(x_ref, wr_ref, wp_ref, w1_ref, b1_ref, w2_ref, b2_ref,
                        we_ref, o_ref):
    x = x_ref[0]                                               # (C, Np), stream dtype
    # G = x @ x^T : contract the lane (N) axis of both operands directly.
    # (If profiling / pl.lower_as_mlir shows Mosaic inserting a per-tile XLU
    #  transpose here, feed the rhs from an (Np, C)-layout view instead.)
    g = lax.dot_general(x, x, (((1,), (1,)), ((), ())),
                        preferred_element_type=jnp.float32)    # (C, C) f32
    m = _fold_weights_to_m(g, wr_ref[...], wp_ref[...], w1_ref[...],
                           b1_ref[...], w2_ref[...], b2_ref[...], we_ref[...])
    y = jnp.dot(m.astype(x.dtype), x, preferred_element_type=jnp.float32)
    o_ref[0] = (x.astype(jnp.float32) + y).astype(o_ref.dtype)


# ---------------------------------------------------------------------------
# Streaming pass 1: partial Gram matrix per (batch, N-split).
# Only the x tile + (C, C) accumulator are resident; no weights in VMEM.
# ---------------------------------------------------------------------------
def _glore_gram_kernel(x_ref, g_ref, g_acc):
    nt = pl.program_id(2)

    @pl.when(nt == 0)
    def _():
        g_acc[...] = jnp.zeros_like(g_acc)

    x = x_ref[0]                                               # (C, TN)
    g_acc[...] += lax.dot_general(x, x, (((1,), (1,)), ((), ())),
                                  preferred_element_type=jnp.float32)

    @pl.when(nt == pl.num_programs(2) - 1)
    def _():
        g_ref[0, 0] = g_acc[...]


# ---------------------------------------------------------------------------
# Streaming pass 2: out = x + M @ x, tiled over the lane-mapped N axis.
# ---------------------------------------------------------------------------
def _glore_apply_kernel(m_ref, x_ref, o_ref):
    x = x_ref[0]                                               # (C, TN)
    y = jnp.dot(m_ref[0], x, preferred_element_type=jnp.float32)
    o_ref[0] = (x.astype(jnp.float32) + y).astype(o_ref.dtype)


def _pick_n_tile(n, chan, stream_bytes, out_bytes, budget_bytes):
    """Largest multiple-of-128 N tile whose pass-2 working set (x and out
    double-buffered + resident M block + pass-1 Gram accumulator) fits the
    VMEM budget; capped at 2048 lanes (diminishing returns past that)."""
    n_up = -(-n // 128) * 128
    per_col = 2 * chan * (stream_bytes + out_bytes)            # x + out, 2 bufs each
    fixed = 2 * chan * chan * stream_bytes + chan * chan * 4   # M (2 bufs) + G acc
    avail = budget_bytes - fixed
    if avail < per_col * 128:
        tn = 128
    else:
        tn = (avail // per_col) // 128 * 128
    return int(max(128, min(tn, 2048, n_up)))


def glore_forward(x, params, *, stream_dtype=None, n_tile=None,
                  force_two_pass=False, vmem_limit_bytes=40 * 1024 * 1024):
    """GloRe forward.  x: (B, C, H, W).  params: see init_params.

    stream_dtype: dtype the N-sized operands (x tiles, and M for the apply
      pass) are streamed in.  bf16 halves HBM traffic of the memory-bound
      passes (recommended on hardware); default keeps the input dtype so the
      exactness test passes.  Accumulation is always f32.
    """
    bsz, chan, h, w = x.shape
    assert chan % 4 == 0, "channel must be divisible by 4"
    c4 = chan // 4
    n = h * w
    out_dtype = x.dtype
    if stream_dtype is None:
        stream_dtype = x.dtype
    stream_bytes = jnp.dtype(stream_dtype).itemsize
    out_bytes = jnp.dtype(out_dtype).itemsize

    wr = params["reduce_dim"]                  # (C, C)
    wp = params["proj"]                        # (C4, C)
    w1 = params["gcn1_w"]                      # (C, C)
    b1 = params["gcn1_b"].reshape(1, chan)     # (1, C)  lane-dense row bias
    w2 = params["gcn2_w"]                      # (C4, C4)
    b2 = params["gcn2_b"].reshape(c4, 1)       # (C4, 1) column bias
    we = params["expand_dim"]                  # (C, C)

    # Headroom below the scoped-VMEM limit for spills / semaphores.
    budget = vmem_limit_bytes - 8 * 1024 * 1024

    if n_tile is None:
        n_tile = _pick_n_tile(n, chan, stream_bytes, out_bytes, budget)
    n_pad = -(-n // n_tile) * n_tile
    n_tiles = n_pad // n_tile

    x_flat = x.reshape(bsz, chan, n).astype(stream_dtype)
    if n_pad != n:
        # Zero columns contribute nothing to G; padded output cols are sliced
        # off below (replaces the old "whole-N" fallback tile).
        x_flat = jnp.pad(x_flat, ((0, 0), (0, 0), (0, n_pad - n)))

    weight_bytes = 4 * (3 * chan * chan + 2 * c4 * chan + c4 * c4 + chan + c4)
    fused_resident = (2 * chan * n_pad * (stream_bytes + out_bytes)  # x/out, 2 bufs
                      + chan * n_pad * 4                             # f32 temp of x
                      + 2 * weight_bytes                             # weights, 2 bufs
                      + 4 * chan * chan * 4)                         # G/M/fold temps
    use_fused = (not force_two_pass) and fused_resident <= budget

    if use_fused:
        # ---- Single fused kernel: x read once, M never round-trips HBM. ----
        out_flat = pl.pallas_call(
            _glore_fused_kernel,
            out_shape=jax.ShapeDtypeStruct((bsz, chan, n_pad), out_dtype),
            grid_spec=pltpu.PrefetchScalarGridSpec(
                num_scalar_prefetch=0,
                grid=(bsz,),
                in_specs=[
                    pl.BlockSpec((1, chan, n_pad), lambda b: (b, 0, 0)),   # x
                    pl.BlockSpec((chan, chan), lambda b: (0, 0)),          # Wr
                    pl.BlockSpec((c4, chan), lambda b: (0, 0)),            # Wp
                    pl.BlockSpec((chan, chan), lambda b: (0, 0)),          # W1
                    pl.BlockSpec((1, chan), lambda b: (0, 0)),             # b1
                    pl.BlockSpec((c4, c4), lambda b: (0, 0)),              # W2
                    pl.BlockSpec((c4, 1), lambda b: (0, 0)),               # b2
                    pl.BlockSpec((chan, chan), lambda b: (0, 0)),          # We
                ],
                out_specs=pl.BlockSpec((1, chan, n_pad), lambda b: (b, 0, 0)),
            ),
            compiler_params=pltpu.CompilerParams(
                dimension_semantics=("parallel",),
                vmem_limit_bytes=vmem_limit_bytes),
        )(x_flat, wr, wp, w1, b1, w2, b2, we)
    else:
        # ---- Streaming path: Gram pass -> XLA fold -> apply pass. ----
        n_split = 2 if (n_tiles % 2 == 0 and n_tiles >= 2) else 1
        tiles_per_split = n_tiles // n_split

        g_parts = pl.pallas_call(
            _glore_gram_kernel,
            out_shape=jax.ShapeDtypeStruct((bsz, n_split, chan, chan),
                                           jnp.float32),
            grid_spec=pltpu.PrefetchScalarGridSpec(
                num_scalar_prefetch=0,
                grid=(bsz, n_split, tiles_per_split),
                in_specs=[pl.BlockSpec(
                    (1, chan, n_tile),
                    lambda b, s, t: (b, 0, s * tiles_per_split + t))],
                out_specs=pl.BlockSpec((1, 1, chan, chan),
                                       lambda b, s, t: (b, s, 0, 0)),
                scratch_shapes=[pltpu.VMEM((chan, chan), jnp.float32)],
            ),
            compiler_params=pltpu.CompilerParams(
                dimension_semantics=("parallel", "parallel", "arbitrary"),
                vmem_limit_bytes=vmem_limit_bytes),
        )(x_flat)

        # Weight folding is O(C^3) per batch, independent of N: do it in plain
        # XLA so the streaming pass carries no weight blocks in VMEM.
        g = g_parts.sum(axis=1)                                  # (B, C, C)
        m = jax.vmap(
            lambda gb: _fold_weights_to_m(gb, wr, wp, w1, b1, w2, b2, we))(g)
        m = m.astype(stream_dtype)                               # halve M DMA in bf16

        out_flat = pl.pallas_call(
            _glore_apply_kernel,
            out_shape=jax.ShapeDtypeStruct((bsz, chan, n_pad), out_dtype),
            grid_spec=pltpu.PrefetchScalarGridSpec(
                num_scalar_prefetch=0,
                grid=(bsz, n_tiles),
                in_specs=[
                    pl.BlockSpec((1, chan, chan), lambda b, t: (b, 0, 0)),   # M
                    pl.BlockSpec((1, chan, n_tile), lambda b, t: (b, 0, t)),  # x
                ],
                out_specs=pl.BlockSpec((1, chan, n_tile),
                                       lambda b, t: (b, 0, t)),
            ),
            compiler_params=pltpu.CompilerParams(
                dimension_semantics=("parallel", "parallel"),
                vmem_limit_bytes=vmem_limit_bytes),
        )(m, x_flat)

    if n_pad != n:
        out_flat = out_flat[:, :, :n]
    return out_flat.reshape(bsz, chan, h, w)


def init_params(channel, key):
    """Deterministic synthetic parameters (shapes match the PyTorch module)."""
    c4 = channel // 4
    keys = jax.random.split(key, 7)
    scale = 0.1
    return {
        "reduce_dim": scale * jax.random.normal(keys[0], (channel, channel), jnp.float32),
        "proj":       scale * jax.random.normal(keys[1], (c4, channel), jnp.float32),
        "gcn1_w":     scale * jax.random.normal(keys[2], (channel, channel), jnp.float32),
        "gcn1_b":     scale * jax.random.normal(keys[3], (channel,), jnp.float32),
        "gcn2_w":     scale * jax.random.normal(keys[4], (c4, c4), jnp.float32),
        "gcn2_b":     scale * jax.random.normal(keys[5], (c4,), jnp.float32),
        "expand_dim": scale * jax.random.normal(keys[6], (channel, channel), jnp.float32),
    }


def glore_reference(x, params):
    """Pure-JAX reference mirroring the PyTorch forward."""
    bsz, chan, h, w = x.shape
    n = h * w
    xf = x.reshape(bsz, chan, n)
    x_red = jnp.einsum("oc,bcn->bon", params["reduce_dim"], xf)
    b_proj = jnp.einsum("oc,bcn->bon", params["proj"], xf)           # (B, C4, N)
    b_t = jnp.swapaxes(b_proj, 1, 2)                                 # (B, N, C4)
    v = jnp.matmul(x_red, b_t)                                       # (B, C, C4)
    v1 = jnp.einsum("oc,bcn->bon", params["gcn1_w"], v) + params["gcn1_b"][None, :, None]
    v1 = jnp.swapaxes(v1, 1, 2)                                      # (B, C4, C)
    v2 = jnp.einsum("oc,bcn->bon", params["gcn2_w"], v1) + params["gcn2_b"][None, :, None]
    v2 = jnp.swapaxes(v2, 1, 2)                                      # (B, C, C4)
    y = jnp.matmul(v2, b_proj)                                       # (B, C, N)
    y = y.reshape(bsz, chan, h, w)
    y = jnp.einsum("oc,bchw->bohw", params["expand_dim"], y)
    return x + y


if __name__ == "__main__":
    key = jax.random.PRNGKey(0)
    k_x, k_p, k_x2 = jax.random.split(key, 3)

    # NOTE: C=16 is far below the MXU tile; fine for correctness, but do not
    # draw performance conclusions from this shape (per review).
    B, C, H, W = 2, 16, 16, 16
    x = jax.random.normal(k_x, (B, C, H, W), jnp.float32)
    params = init_params(C, k_p)
    ref = glore_reference(x, params)

    # 1) Fused single-kernel path (per-batch x resident in VMEM), f32 exact.
    out = jax.block_until_ready(glore_forward(x, params))
    assert out.shape == (B, C, H, W)
    assert jnp.allclose(out, ref, atol=1e-3, rtol=1e-3), "fused f32 mismatch"

    # 2) Streaming two-pass path (forced), f32 exact.
    out2 = jax.block_until_ready(glore_forward(x, params, force_two_pass=True))
    assert jnp.allclose(out2, ref, atol=1e-3, rtol=1e-3), "two-pass f32 mismatch"

    # 3) bf16-streamed x / M (the production setting on v5e/v6e/v7x); Gram and
    #    apply still accumulate in f32, so only a loose tolerance here.
    out_bf16 = jax.block_until_ready(
        glore_forward(x, params, stream_dtype=jnp.bfloat16))
    assert jnp.allclose(out_bf16, ref, atol=1e-1, rtol=1e-1), "bf16 mismatch"

    # 4) Larger spatial size exercising multi-tile Gram accumulation and the
    #    2-way "parallel" N split of the streaming Gram pass.
    x_big = jax.random.normal(k_x2, (B, C, 32, 32), jnp.float32)
    ref_big = glore_reference(x_big, params)
    out_big = jax.block_until_ready(
        glore_forward(x_big, params, force_two_pass=True, n_tile=128))
    assert jnp.allclose(out_big, ref_big, atol=1e-3, rtol=1e-3), "split mismatch"

    print("KERNEL_OK")
</pallas_src>

<mosaic_0001>
module attributes {stable_mosaic.version = 11 : i64} {
  func.func @_glore_fused_kernel(%arg0: i32, %arg1: memref<1x16x256xf32, #tpu.memory_space<vmem>>, %arg2: memref<16x16xf32, #tpu.memory_space<vmem>>, %arg3: memref<4x16xf32, #tpu.memory_space<vmem>>, %arg4: memref<16x16xf32, #tpu.memory_space<vmem>>, %arg5: memref<1x16xf32, #tpu.memory_space<vmem>>, %arg6: memref<4x4xf32, #tpu.memory_space<vmem>>, %arg7: memref<4x1xf32, #tpu.memory_space<vmem>>, %arg8: memref<16x16xf32, #tpu.memory_space<vmem>>, %arg9: memref<1x16x256xf32, #tpu.memory_space<vmem>>) attributes {dimension_semantics = [#tpu.dimension_semantics<parallel>], iteration_bounds = array<i64: 2>, scalar_prefetch = 0 : i64, scratch_operands = 0 : i64, tpu.core_type = #tpu.core_type<tc>, window_params = [{transform_indices = @transform_0, window_bounds = array<i64: 1, 16, 256>}, {pipeline_mode = #tpu.pipeline_mode<synchronous>, transform_indices = @transform_1, window_bounds = array<i64: 16, 16>}, {pipeline_mode = #tpu.pipeline_mode<synchronous>, transform_indices = @transform_2, window_bounds = array<i64: 4, 16>}, {pipeline_mode = #tpu.pipeline_mode<synchronous>, transform_indices = @transform_3, window_bounds = array<i64: 16, 16>}, {pipeline_mode = #tpu.pipeline_mode<synchronous>, transform_indices = @transform_4, window_bounds = array<i64: 1, 16>}, {pipeline_mode = #tpu.pipeline_mode<synchronous>, transform_indices = @transform_5, window_bounds = array<i64: 4, 4>}, {pipeline_mode = #tpu.pipeline_mode<synchronous>, transform_indices = @transform_6, window_bounds = array<i64: 4, 1>}, {pipeline_mode = #tpu.pipeline_mode<synchronous>, transform_indices = @transform_7, window_bounds = array<i64: 16, 16>}, {transform_indices = @transform_8, window_bounds = array<i64: 1, 16, 256>}]} {
    %c0 = arith.constant 0 : index
    %c0_0 = arith.constant 0 : index
    %c0_1 = arith.constant 0 : index
    %0 = vector.load %arg1[%c0, %c0_0, %c0_1] : memref<1x16x256xf32, #tpu.memory_space<vmem>>, vector<1x16x256xf32>
    %1 = vector.shape_cast %0 : vector<1x16x256xf32> to vector<16x256xf32>
    %cst = arith.constant dense<0.000000e+00> : vector<16x16xf32>
    %2 = tpu.matmul %1, %1, %cst {dimension_numbers = #tpu.dot_dimension_numbers<[1], [1], [0], [0], [0, 0, 1, 0], [], []>} : vector<16x256xf32>, vector<16x256xf32>, vector<16x16xf32> -> vector<16x16xf32>
    %c0_2 = arith.constant 0 : index
    %c0_3 = arith.constant 0 : index
    %3 = vector.load %arg2[%c0_2, %c0_3] : memref<16x16xf32, #tpu.memory_space<vmem>>, vector<16x16xf32>
    %c0_4 = arith.constant 0 : index
    %c0_5 = arith.constant 0 : index
    %4 = vector.load %arg3[%c0_4, %c0_5] : memref<4x16xf32, #tpu.memory_space<vmem>>, vector<4x16xf32>
    %c0_6 = arith.constant 0 : index
    %c0_7 = arith.constant 0 : index
    %5 = vector.load %arg4[%c0_6, %c0_7] : memref<16x16xf32, #tpu.memory_space<vmem>>, vector<16x16xf32>
    %c0_8 = arith.constant 0 : index
    %c0_9 = arith.constant 0 : index
    %6 = vector.load %arg5[%c0_8, %c0_9] : memref<1x16xf32, #tpu.memory_space<vmem>>, vector<1x16xf32>
    %c0_10 = arith.constant 0 : index
    %c0_11 = arith.constant 0 : index
    %7 = vector.load %arg6[%c0_10, %c0_11] : memref<4x4xf32, #tpu.memory_space<vmem>>, vector<4x4xf32>
    %c0_12 = arith.constant 0 : index
    %c0_13 = arith.constant 0 : index
    %8 = vector.load %arg7[%c0_12, %c0_13] : memref<4x1xf32, #tpu.memory_space<vmem>>, vector<4x1xf32>
    %c0_14 = arith.constant 0 : index
    %c0_15 = arith.constant 0 : index
    %9 = vector.load %arg8[%c0_14, %c0_15] : memref<16x16xf32, #tpu.memory_space<vmem>>, vector<16x16xf32>
    %cst_16 = arith.constant dense<0.000000e+00> : vector<4x16xf32>
    %10 = tpu.matmul %4, %2, %cst_16 {dimension_numbers = #tpu.dot_dimension_numbers<[1], [0], [0], [1], [0, 0, 1, 1], [], []>} : vector<4x16xf32>, vector<16x16xf32>, vector<4x16xf32> -> vector<4x16xf32>
    %cst_17 = arith.constant dense<0.000000e+00> : vector<4x16xf32>
    %11 = tpu.matmul %10, %3, %cst_17 {dimension_numbers = #tpu.dot_dimension_numbers<[1], [1], [0], [0], [0, 0, 1, 0], [], []>} : vector<4x16xf32>, vector<16x16xf32>, vector<4x16xf32> -> vector<4x16xf32>
    %cst_18 = arith.constant dense<0.000000e+00> : vector<4x16xf32>
    %12 = tpu.matmul %11, %5, %cst_18 {dimension_numbers = #tpu.dot_dimension_numbers<[1], [1], [0], [0], [0, 0, 1, 0], [], []>} : vector<4x16xf32>, vector<16x16xf32>, vector<4x16xf32> -> vector<4x16xf32>
    %13 = vector.broadcast %6 : vector<1x16xf32> to vector<4x16xf32>
    %14 = arith.addf %12, %13 : vector<4x16xf32>
    %cst_19 = arith.constant dense<0.000000e+00> : vector<4x16xf32>
    %15 = tpu.matmul %7, %14, %cst_19 {dimension_numbers = #tpu.dot_dimension_numbers<[1], [0], [0], [1], [0, 0, 1, 1], [], []>} : vector<4x4xf32>, vector<4x16xf32>, vector<4x16xf32> -> vector<4x16xf32>
    %16 = vector.broadcast %8 : vector<4x1xf32> to vector<4x16xf32>
    %17 = arith.addf %15, %16 : vector<4x16xf32>
    %cst_20 = arith.constant dense<0.000000e+00> : vector<16x4xf32>
    %18 = tpu.matmul %9, %17, %cst_20 {dimension_numbers = #tpu.dot_dimension_numbers<[1], [1], [0], [0], [0, 0, 1, 0], [], []>} : vector<16x16xf32>, vector<4x16xf32>, vector<16x4xf32> -> vector<16x4xf32>
    %cst_21 = arith.constant dense<0.000000e+00> : vector<16x16xf32>
    %19 = tpu.matmul %18, %4, %cst_21 {dimension_numbers = #tpu.dot_dimension_numbers<[1], [0], [0], [1], [0, 0, 1, 1], [], []>} : vector<16x4xf32>, vector<4x16xf32>, vector<16x16xf32> -> vector<16x16xf32>
    %cst_22 = arith.constant dense<0.000000e+00> : vector<16x256xf32>
    %20 = tpu.matmul %19, %1, %cst_22 {dimension_numbers = #tpu.dot_dimension_numbers<[1], [0], [0], [1], [0, 0, 1, 1], [], []>} : vector<16x16xf32>, vector<16x256xf32>, vector<16x256xf32> -> vector<16x256xf32>
    %21 = arith.addf %1, %20 : vector<16x256xf32>
    %c0_23 = arith.constant 0 : index
    %c0_24 = arith.constant 0 : index
    %c0_25 = arith.constant 0 : index
    %22 = vector.load %arg9[%c0_23, %c0_24, %c0_25] : memref<1x16x256xf32, #tpu.memory_space<vmem>>, vector<1x16x256xf32>
    %23 = vector.shape_cast %22 : vector<1x16x256xf32> to vector<16x256xf32>
    %24 = vector.shape_cast %21 : vector<16x256xf32> to vector<1x16x256xf32>
    tpu.vector_store %arg9[%c0_23, %c0_24, %c0_25], %24 {strides = array<i32>} : memref<1x16x256xf32, #tpu.memory_space<vmem>>, vector<1x16x256xf32>,
    return
  }
  func.func @transform_0(%arg0: i32) -> (i32, i32, i32) {
    %c0_i32 = arith.constant 0 : i32
    %c0_i32_0 = arith.constant 0 : i32
    %c0_i32_1 = arith.constant 0 : i32
    return %arg0, %c0_i32, %c0_i32_0 : i32, i32, i32
  }
  func.func @transform_1(%arg0: i32) -> (i32, i32) {
    %c0_i32 = arith.constant 0 : i32
    %c0_i32_0 = arith.constant 0 : i32
    %c0_i32_1 = arith.constant 0 : i32
    return %c0_i32, %c0_i32_0 : i32, i32
  }
  func.func @transform_2(%arg0: i32) -> (i32, i32) {
    %c0_i32 = arith.constant 0 : i32
    %c0_i32_0 = arith.constant 0 : i32
    %c0_i32_1 = arith.constant 0 : i32
    return %c0_i32, %c0_i32_0 : i32, i32
  }
  func.func @transform_3(%arg0: i32) -> (i32, i32) {
    %c0_i32 = arith.constant 0 : i32
    %c0_i32_0 = arith.constant 0 : i32
    %c0_i32_1 = arith.constant 0 : i32
    return %c0_i32, %c0_i32_0 : i32, i32
  }
  func.func @transform_4(%arg0: i32) -> (i32, i32) {
    %c0_i32 = arith.constant 0 : i32
    %c0_i32_0 = arith.constant 0 : i32
    %c0_i32_1 = arith.constant 0 : i32
    return %c0_i32, %c0_i32_0 : i32, i32
  }
  func.func @transform_5(%arg0: i32) -> (i32, i32) {
    %c0_i32 = arith.constant 0 : i32
    %c0_i32_0 = arith.constant 0 : i32
    %c0_i32_1 = arith.constant 0 : i32
    return %c0_i32, %c0_i32_0 : i32, i32
  }
  func.func @transform_6(%arg0: i32) -> (i32, i32) {
    %c0_i32 = arith.constant 0 : i32
    %c0_i32_0 = arith.constant 0 : i32
    %c0_i32_1 = arith.constant 0 : i32
    return %c0_i32, %c0_i32_0 : i32, i32
  }
  func.func @transform_7(%arg0: i32) -> (i32, i32) {
    %c0_i32 = arith.constant 0 : i32
    %c0_i32_0 = arith.constant 0 : i32
    %c0_i32_1 = arith.constant 0 : i32
    return %c0_i32, %c0_i32_0 : i32, i32
  }
  func.func @transform_8(%arg0: i32) -> (i32, i32, i32) {
    %c0_i32 = arith.constant 0 : i32
    %c0_i32_0 = arith.constant 0 : i32
    %c0_i32_1 = arith.constant 0 : i32
    return %arg0, %c0_i32, %c0_i32_0 : i32, i32, i32
  }
}

</mosaic_0001>

<bundles_post_ra>
// kernel: tpu_custom_call.1
= control target key start
LH: loop header
LB: loop body
LE: loop exit
PB: predicated region body
PF: predicated region fallthrough
CT: control target
= control target key end

     0   :  { %13 = vsyncpa [#allocation3], 0  ;;  %s2010_s0 = inlined_call_operand.hbm [shape: f32[2,16,256], index: 0, kind: input, shape index: {}]   ;;  %s2011_s1 = inlined_call_operand.hbm [shape: f32[16,16], index: 1, kind: input, shape index: {}]   ;;  %s2012_s2 = inlined_call_operand.hbm [shape: f32[4,16], index: 2, kind: input, shape index: {}]   ;;  %s2013_s3 = inlined_call_operand.vmem [shape: f32[16,16], index: 3, kind: input, shape index: {}]   ;;  %s2014_s4 = inlined_call_operand.hbm [shape: f32[1,16], index: 4, kind: input, shape index: {}]   ;;  %s2015_s5 = inlined_call_operand.vmem [shape: f32[4,4], index: 5, kind: input, shape index: {}]   ;;  %s2016_s6 = inlined_call_operand.vmem [shape: f32[4,1], index: 6, kind: input, shape index: {}]   ;;  %s2017_s7 = inlined_call_operand.hbm [shape: f32[16,16], index: 7, kind: input, shape index: {}]   ;;  %s2018_s8 = inlined_call_operand.hbm [shape: f32[2,16,256], index: 8, kind: output, shape index: {}]  }
   0x1   :  { %15 = vsyncpa [#allocation3 + $0x1], 0 }
   0x2   :  { %16 = vsyncpa [#allocation6], 0 }
   0x3   :  { %17 = vsyncpa [#allocation9], 0 }
   0x4   :  { %18 = vsyncpa [#allocation4], 0 }
   0x5   :  { %20 = vsyncpa [#allocation4 + $0x1], 0  ;;  %s1662_s27 = smov 0   ;;  %s1664_s28 = smov 0  }
   0x6   :  { %s1666_s29 = smov 0   ;;  %s1668_s30 = smov 0  }
   0x7 LB: > { %2024 = sst [smem:[#allocation16_spill]] %s1587_s27  ;;  %s1683_s9 = sadd.s32 4294967295, %s1599_s30   ;;  %s1599_s30 = sphi %s1668_s30, %s2047_s30   ;;  %s1595_s29 = sphi %s1666_s29, %s2046_s29   ;;  %s1591_s28 = sphi %s1664_s28, %s2045_s28   ;;  %s1587_s27 = sphi %s1662_s27, %s2044_s27  }
   0x8   : > { %s1171_s10 = sadd.s32 4294967294, %s1599_s30   ;;  %p46_p0 = scmp.ne.s32.totalorder %s1591_s28, %s1587_s27 }
   0x9   : > { %p2019_p1 = scmp.eq.s32.totalorder %s1683_s9, 0  ;;  %p223_p3 = scmp.eq.s32.totalorder %s1171_s10, 1 }
   0xa   : > { %p1172_p5 = scmp.ge.s32.totalorder %s1599_s30, 1  ;;  %p230_p7 = scmp.lt.s32.totalorder %s1599_s30, 3 }
   0xb   : > { %p1692_p4 = por %p2019_p1, %p46_p0  ;;  %p1697_p6 = por %p223_p3, %p46_p0 }
   0xc   : > { %p1702_p8 = pnand %p1172_p5, %p230_p7  ;;  %s1601_s14 = smov [#allocation5]  }
   0xd   : > { %s2025_s11 = scalar_select %p1692_p4, 1, 0 }
   0xe   : > { %s2026_s12 = scalar_select %p1697_p6, 1, 0 }
   0xf   : > { %s2028_s13 = scalar_select %p1702_p8, 1, 0 }
  0x10   : > { %2027 = sst [smem:[#allocation17_spill]] %s2026_s12  ;;  %s242_s15 = sshll.u32 %s1601_s14, 4  ;;  %s1706_s15 = int_to_ptr.vmem [resolvable:$true] %s242_s15 }
  0x11   : > { %p1305_p9 = pneg %p1702_p8  ;;  %s1602_s17 = smov [#allocation8]  }
  0x12   : > { %s270_s18 = sshll.u32 %s1602_s17, 4  ;;  %s1603_s19 = smov [#allocation7]   ;;  %s1717_s18 = int_to_ptr.vmem [resolvable:$true] %s270_s18 }
  0x13   : > { %p1713_p11 = pnand %p1305_p9, %p2019_p1  ;;  %s1719_s20 = sshll.u32 %s1603_s19, 4  ;;  %s257_s20 = int_to_ptr.vmem [resolvable:$true] %s1719_s20 }
  0x14   : > { %s1383_s23 = scalar_lea.hbm %s2011_s1, 256 }
  0x15   : > { %p1384_p12 = scmp.ne.s32.totalorder %s2011_s1, %s1383_s23  ;;  %p1729_p13 = pneg %p1713_p11 }
  0x16   : > { %p1390_p5 = scmp.lt.u32.totalorder %s1383_s23, %s2011_s1 }
  0x17   : > { %p1386_p0 = pnand %p1729_p13, %p1384_p12 }
  0x19   : > { %p1387_p3 = pneg %p1386_p0 }
  0x1b   : > { %p1392_p7 = pnand %p1390_p5, %p1387_p3 }
  0x1d   : > { %1395 = shalt.err (!%p1392_p7)
}
  0x1e   : > { %s1396_s17 = scalar_lea.vmem %s1706_s15, 256  ;;  %p1404_p2 = scmp.lt.s32.totalorder %s1706_s15, %s1706_s15 }
  0x1f   : > { %p1397_p9 = scmp.ne.s32.totalorder %s1706_s15, %s1396_s17  ;;  %p1405_p6 = scmp.lt.s32.totalorder %s1396_s17, %s1396_s17 }
  0x21   : > { %p1399_p10 = pnand %p1397_p9, %p1729_p13  ;;  %p1406_p12 = por %p1405_p6, %p1404_p2 }
  0x23   : > { %p1400_p1 = pneg %p1399_p10 }
  0x25   : > { %p1407_p0 = pnand %p1406_p12, %p1400_p1 }
  0x27   : > { %1410 = shalt.err (!%p1407_p0)
}
  0x28   : > { %s1604_s19 = smov 128   ;;  %s1605_s21 = smov 8  }
  0x29   : > { %1308 = dma.hbm_to_vmem [thread:$0]  (!%p1713_p11), %s2011_s1, 256, %s1706_s15, [#allocation6], %s1604_s19, %s1604_s19, %s1605_s21  }
  0x2a   : > { %s1411_s10 = scalar_lea.hbm %s2014_s4, 16 }
  0x2b   : > { %p1412_p1 = scmp.ne.s32.totalorder %s2014_s4, %s1411_s10  ;;  %p1418_p10 = scmp.lt.u32.totalorder %s1411_s10, %s2014_s4 }
  0x2d   : > { %p1414_p2 = pnand %p1412_p1, %p1729_p13 }
  0x2f   : > { %p1415_p6 = pneg %p1414_p2 }
  0x31   : > { %p1420_p3 = pnand %p1418_p10, %p1415_p6 }
  0x33   : > { %1423 = shalt.err (!%p1420_p3)
}
  0x34   : > { %s1424_s15 = scalar_lea.vmem %s1717_s18, 16  ;;  %s1431_s22 = scalar_lea.vmem %s1717_s18, 32 }
  0x35   : > { %p1425_p5 = scmp.ne.s32.totalorder %s1717_s18, %s1424_s15  ;;  %p1432_p12 = scmp.lt.s32.totalorder %s1717_s18, %s1717_s18 }
  0x36   : > { %p1433_p0 = scmp.lt.s32.totalorder %s1431_s22, %s1424_s15 }
  0x37   : > { %p1427_p7 = pnand %p1425_p5, %p1729_p13 }
  0x38   : > { %p1434_p1 = por %p1433_p0, %p1432_p12 }
  0x39   : > { %p1428_p9 = pneg %p1427_p7 }
  0x3b   : > { %p1435_p2 = pnand %p1434_p1, %p1428_p9 }
  0x3d   : > { %1438 = shalt.err (!%p1435_p2)
}
  0x3e   : > { %1314 = dma.hbm_to_vmem [thread:$0]  (!%p1713_p11), %s2014_s4, 16, %s1717_s18, [#allocation9]  }
  0x3f   : > { %s1439_s25 = scalar_lea.hbm %s2012_s2, 64 }
  0x40   : > { %p1440_p6 = scmp.ne.s32.totalorder %s2012_s2, %s1439_s25  ;;  %p1446_p5 = scmp.lt.u32.totalorder %s1439_s25, %s2012_s2 }
  0x42   : > { %p1442_p10 = pnand %p1440_p6, %p1729_p13 }
  0x44   : > { %p1443_p3 = pneg %p1442_p10 }
  0x46   : > { %p1448_p7 = pnand %p1446_p5, %p1443_p3 }
  0x48   : > { %1451 = shalt.err (!%p1448_p7)
}
  0x49   : > { %s1452_s22 = scalar_lea.vmem %s257_s20, 64  ;;  %p1460_p1 = scmp.lt.s32.totalorder %s257_s20, %s257_s20 }
  0x4a   : > { %p1453_p9 = scmp.ne.s32.totalorder %s257_s20, %s1452_s22  ;;  %p1461_p2 = scmp.lt.s32.totalorder %s1452_s22, %s1452_s22 }
  0x4c   : > { %p1455_p12 = pnand %p1453_p9, %p1729_p13  ;;  %p1462_p4 = por %p1461_p2, %p1460_p1 }
  0x4e   : > { %p1456_p0 = pneg %p1455_p12 }
  0x50   : > { %p1463_p8 = pnand %p1462_p4, %p1456_p0 }
  0x52   : > { %1466 = shalt.err (!%p1463_p8)
}
  0x53   : > { %1311 = dma.hbm_to_vmem [thread:$0]  (!%p1713_p11), %s2012_s2, 64, %s257_s20, [#allocation6]  }
  0x54   : > { %s1606_s12 = smov [#allocation10]   ;;  %s1467_s10 = scalar_lea.hbm %s2017_s7, 256 }
  0x55   : > { %s286_s23 = sshll.u32 %s1606_s12, 4  ;;  %p1468_p6 = scmp.ne.s32.totalorder %s2017_s7, %s1467_s10  ;;  %s287_s23 = int_to_ptr.vmem [resolvable:$true] %s286_s23 }
  0x56   : > { %p1474_p10 = scmp.lt.u32.totalorder %s1467_s10, %s2017_s7 }
  0x57   : > { %p1470_p4 = pnand %p1468_p6, %p1729_p13 }
  0x59   : > { %p1471_p8 = pneg %p1470_p4 }
  0x5b   : > { %p1476_p3 = pnand %p1474_p10, %p1471_p8 }
  0x5d   : > { %1479 = shalt.err (!%p1476_p3)
}
  0x5e   : > { %s1480_s20 = scalar_lea.vmem %s287_s23, 256  ;;  %p1488_p12 = scmp.lt.s32.totalorder %s287_s23, %s287_s23 }
  0x5f   : > { %p1481_p5 = scmp.ne.s32.totalorder %s287_s23, %s1480_s20  ;;  %p1489_p0 = scmp.lt.s32.totalorder %s1480_s20, %s1480_s20 }
  0x61   : > { %p1483_p7 = pnand %p1481_p5, %p1729_p13  ;;  %p1490_p1 = por %p1489_p0, %p1488_p12 }
  0x63   : > { %p1484_p9 = pneg %p1483_p7 }
  0x65   : > { %p1491_p2 = pnand %p1490_p1, %p1484_p9 }
  0x67   : > { %1494 = shalt.err (!%p1491_p2)
}
  0x68   : > { %1317 = dma.hbm_to_vmem [thread:$0]  (!%p1713_p11), %s2017_s7, 256, %s287_s23, [#allocation9], %s1604_s19, %s1604_s19, %s1605_s21  }
  0x69   : > { %s1818_s26 = sadd.s32 1, %s1599_s30   ;;  %s33_s16 = sadd.s32 1, %s1595_s29 }
  0x6a   : > { %s30_s12 = ssub.s32 %s1599_s30, %s1818_s26  ;;  %p40_p13 = scmp.ne.s32.totalorder %s1595_s29, %s1591_s28 }
  0x6b   : > { %p31_p6 = scmp.eq.s32.totalorder %s30_s12, 0  ;;  %p41_p4 = scmp.eq.s32.totalorder %s1599_s30, 0 }
  0x6c   : > { %p2031_p8 = scmp.eq.s32.totalorder %s1683_s9, 1  ;;  %p1330_p3 = scmp.lt.s32.totalorder %s1599_s30, 2 }
  0x6d   : > { %s1834_s25 = scalar_select %p31_p6, %s1595_s29, %s33_s16  }
  0x6e   : > { %p1828_p10 = por %p2031_p8, %p40_p13  ;;  %p42_p5 = por %p41_p4, %p40_p13 }
  0x6f   : > { %s300_s10 = sand.u32 1, %s1595_s29   ;;  %s1211_s19 = sshll.u32 %s1599_s30, 9 }
  0x70   : > { %s1178_s14 = sshll.u32 %s300_s10, 5  ;;  %s1841_s17 = scalar_lea.hbm %s2010_s0, %s1211_s19 }
  0x71   : > { %s304_s15 = scalar_lea.vmem [#allocation2], %s1178_s14  ;;  %p1845_p11 = pnand %p1330_p3, %p42_p5 }
  0x72   : > { %s311_s22 = sshll.u32 %s304_s15, 4  ;;  %s1849_s18 = scalar_lea.sflag [#allocation3], %s300_s10  ;;  %s1843_s22 = int_to_ptr.vmem [resolvable:$true] %s311_s22 }
  0x73   : > { %s1495_s27 = scalar_lea.hbm %s1841_s17, 512  ;;  %p1497_p9 = pneg %p1845_p11 }
  0x74   : > { %p1496_p7 = scmp.ne.s32.totalorder %s1841_s17, %s1495_s27  ;;  %s1500_s14 = scalar_lea.hbm %s2010_s0, 1024 }
  0x75   : > { %p1501_p1 = scmp.lt.u32.totalorder %s1841_s17, %s2010_s0  ;;  %p1502_p2 = scmp.lt.u32.totalorder %s1500_s14, %s1495_s27 }
  0x76   : > { %p1498_p12 = pnand %p1497_p9, %p1496_p7  ;;  %p1504_p6 = scmp.lt.u32.totalorder %s1495_s27, %s1841_s17 }
  0x77   : > { %p1503_p13 = por %p1502_p2, %p1501_p1 }
  0x78   : > { %p1499_p0 = pneg %p1498_p12 }
  0x79   : > { %p1505_p4 = por %p1504_p6, %p1503_p13 }
  0x7b   : > { %p1506_p8 = pnand %p1505_p4, %p1499_p0 }
  0x7d   : > { %1509 = shalt.err (!%p1506_p8)
}
  0x7e   : > { %s1510_s10 = scalar_lea.vmem %s1843_s22, 512  ;;  %s1607_s23 = smov [#allocation2]  }
  0x7f   : > { %p1511_p3 = scmp.ne.s32.totalorder %s1843_s22, %s1510_s10  ;;  %s1515_s15 = sshll.u32 %s1607_s23, 4  ;;  %s1516_s15 = int_to_ptr.vmem [resolvable:$false] %s1515_s15 }
  0x80   : > { %s1517_s16 = scalar_lea.vmem %s1516_s15, 1024  ;;  %p1518_p12 = scmp.lt.s32.totalorder %s1843_s22, %s1516_s15 }
  0x81   : > { %p1513_p5 = pnand %p1511_p3, %p1497_p9  ;;  %p1519_p1 = scmp.lt.s32.totalorder %s1517_s16, %s1510_s10 }
  0x83   : > { %p1514_p7 = pneg %p1513_p5  ;;  %p1520_p2 = por %p1519_p1, %p1518_p12 }
  0x85   : > { %p1521_p13 = pnand %p1520_p2, %p1514_p7 }
  0x87   : > { %1524 = shalt.err (!%p1521_p13)
}
  0x88   : > { %s1608_s27 = smov 256   ;;  %s1609_s12 = smov 16  }
  0x89   : > { %1321 = dma.hbm_to_vmem [thread:$0]  (!%p1845_p11), %s1841_s17, 512, %s1843_s22, %s1849_s18, %s1608_s27, %s1608_s27, %s1609_s12  }
  0x8a   : > { %p2034_p9 = scmp.ne.s32.totalorder %s2028_s13, 0 }
  0x8b   : > { %s1880_s14 = sand.u32 (!%p2034_p9), 1, %s1591_s28   ;;  %p2035_p0 = scmp.ne.s32.totalorder (!%p2034_p9), %s2025_s11, 0 }
  0x8c   : > { %323 = sbr.rel (%p2034_p9) target bundleno = 1905 (0x771), region = 52  ;;  %s1182_s19 = sshll.u32 (!%p2034_p9), %s1880_s14, 5 }
  0x8d   : > { %s326_s21 = scalar_lea.sflag (!%p2034_p9), [#allocation3], %s1880_s14  ;;  %s329_s10 = scalar_lea.vmem (!%p2034_p9), [#allocation2], %s1182_s19 }
  0x93   : > { %1570 = dma.done.wait (%p2035_p0), %s326_s21, 512  }
  0x94   : > { %1572 = vsyncadd (%p2035_p0), %s326_s21, 4294966784  ;;  %p2036_p11 = scmp.eq.s32.totalorder %s1683_s9, 0 }
  0x96   : > { %1574 = dma.done.wait (%p2036_p11), [#allocation6], 320   ;;  %p2037_p6 = pmov %p2036_p11 }
  0x98   : > { %1576 = vsyncadd (%p2037_p6), [#allocation6], 4294966976  ;;  %p2038_p4 = pmov %p2037_p6 }
  0x9a   : > { %1578 = dma.done.wait (%p2038_p4), [#allocation9], 272   ;;  %p2039_p8 = pmov %p2038_p4 }
  0x9b   : > { %v1898_v0 = vld [vmem:[%s329_s10 + $0x8] sm:$0xff]  ;;  %v1900_v1 = vld [vmem:[%s329_s10 + $0x18] sm:$0xff]  ;;  %v1902_v2 = vld [vmem:[%s329_s10] sm:$0xff]  ;;  %v1610_v6 = vmov 0.0|0.0   ;;  %vm1611_vm0 = vmmov 0   ;;  %v1612_v7 = vmov 0.0  }
  0x9c   : > { %1580 = vsyncadd (%p2039_p8), [#allocation9], 4294967024  ;;  %v1266_v3 = vpack.c.bf16 %v1900_v1, %v1898_v0  ;;  %v1906_v4 = vld [vmem:[%s329_s10 + $0x10] sm:$0xff]  ;;  %446 = vmatprep.mubr.f32.mxu0 %v1898_v0  ;;  %1270 = vmatprep.subr.bf16.mxu1 %v1610_v6  ;;  %vm467_vm1 = vcmask 130048   ;;  %v457_v14 = vld [vmem:[#allocation5] sm:$0xff]  ;;  %v1613_v25 = vmov 0  }
  0x9d   : > { %v1268_v5 = vpack.c.bf16 %v1906_v4, %v1902_v2  ;;  %1234 = vmatprep.mubr.msk.f32.mxu1 %vm1611_vm0, %v1612_v7  ;;  %v459_v13 = vld [vmem:[#allocation7] sm:$0xf]  ;;  %v458_v15 = vld [vmem:[#allocation5 + $0x8] sm:$0xff]  ;;  %vm1275_vm2 = vmpackc.low %vm467_vm1, %vm467_vm1  ;;  %1382 = vset.pattern.permute.xlu0 %v1613_v25  ;;  %vm714_vm3 = vcmask 1043456   ;;  %vm710_vm4 = vcmask 31744   ;;  %s377_s16 = scalar_lea.vmem [#allocation11], %s1182_s19 }
  0x9e   : > { %1267 = vmatprep.subr.bf16.mxu0 %v1266_v3  ;;  %v1274_v16 = vpack.c.bf16 %v458_v15, %v457_v14  ;;  %v460_v17 = vld [vmem:[%s2013_s3] sm:$0xff]  ;;  %v461_v18 = vld [vmem:[%s2013_s3 + $0x8] sm:$0xff]  ;;  %v1192_v26 = vld [vmem:[#allocation8] ss:$0 sm:$0xff]  ;;  %s1060_s27 = sshll.u32 %s377_s16, 4  ;;  %s1212_s12 = sshll.u32 %s1683_s9, 9  ;;  %s1959_s27 = int_to_ptr.vmem [resolvable:$true] %s1060_s27 }
  0x9f   : > { %1269 = vmatpush1.bf16.xpose.msra.mxu0 %v1268_v5  ;;  %v1278_v19 = vpack.c.bf16 %v461_v18, %v460_v17  ;;  %v464_v24 = vld [vmem:[%s2016_s6] sm:$0xf]  ;;  %v465_v31 = vld [vmem:[#allocation10] sm:$0xff]  ;;  %s1965_s19 = scalar_lea.hbm %s2018_s8, %s1212_s12  ;;  %s1047_s9 = scalar_lea.sflag [#allocation4], %s1880_s14 }
  0xa0   : > { %1277 = vmatprep.subr.bf16.mxu0 %v1610_v6  ;;  %707 = vperm.xlu0 %1382, %v464_v24   ;;  %v463_v30 = vld [vmem:[%s2015_s5] sm:$0xf]  ;;  %s1525_s11 = scalar_lea.vmem %s1959_s27, 512  ;;  %s1614_s13 = smov [#allocation11]  }
  0xa1   : > { %v466_v36 = vld [vmem:[#allocation10 + $0x8] sm:$0xff]  ;;  %p1526_p3 = scmp.ne.s32.totalorder %s1959_s27, %s1525_s11  ;;  %s1529_s17 = sshll.u32 %s1614_s13, 4  ;;  %s1530_s17 = int_to_ptr.vmem [resolvable:$false] %s1529_s17 }
  0xa2   : > { %s1531_s22 = scalar_lea.vmem %s1530_s17, 1024  ;;  %p1532_p12 = scmp.lt.s32.totalorder %s1959_s27, %s1530_s17 }
  0xa3   : > { %p1527_p5 = pnand %p1526_p3, %p1828_p10  ;;  %p1533_p1 = scmp.lt.s32.totalorder %s1531_s22, %s1525_s11 }
  0xa5   : > { %p1528_p7 = pneg %p1527_p5  ;;  %p1534_p2 = por %p1533_p1, %p1532_p12 }
  0xa6   : > { %447 = vmatmul.mubr.f32.vlgmr.msra.gmra.mrb[0].mxu0 %v1902_v2 }
  0xa7   : > { %451 = vmatprep.mubr.f32.mxu0 %v1900_v1  ;;  %1280 = vmatpush3.bf16.xpose.msk.msra.mxu0 %vm1275_vm2, %v1278_v19  ;;  %p1535_p13 = pnand %p1534_p2, %p1528_p7 }
  0xa8   : > { %1282 = vmatprep.subr.bf16.mxu0 %v1266_v3 }
  0xaa   : > { %452 = vmatmul.mubr.f32.gmra.mrb[2].mxu0 %v1906_v4 }
  0xab   : > { %1248 = vmatprep.mubr.msk.f32.mxu0 %vm1611_vm0, %v1612_v7 }
 0x11f   : > { %v708_v32 = vpop.permute.xlu0 %707 }
 0x179   : > { %v448_v8 = vpop.f32.mrb[0].mxu0 }
 0x17a   : > { %v450_v9 = vpop.f32.mrb[1].mxu0 }
 0x17d   : > { %v453_v10 = vpop.f32.mrb[2].mxu0 }
 0x17e   : > { %v1271_v11 = vpack.c.bf16 %v453_v10, %v448_v8  ;;  %v455_v12 = vpop.f32.mrb[3].mxu0 }
 0x180   : > { %1272 = vmatpush3.bf16.msra.mxu1 %v1271_v11 }
 0x181   : > { %1273 = vmatprep.subr.bf16.mxu1 %v1610_v6 }
 0x183   : > { %1235 = vmatmul.mubr.msk.f32.vlgmr.msra.gmra.mrb[0].mxu1 %vm467_vm1, %v459_v13 }
 0x184   : > { %1241 = vmatprep.mubr.msk.f32.mxu1 %vm1611_vm0, %v1612_v7 }
 0x189   : > { %1276 = vmatpush3.bf16.xpose.msk.msra.mxu1 %vm1275_vm2, %v1274_v16 }
 0x18a   : > { %1251 = vmatprep.subr.mxu1 %v1612_v7 }
 0x256   : > { %v537_v20 = vpop.f32.mrb[0].mxu1 }
 0x257   : > { %v1236_v21 = vpop.f32.mrb[1].mxu1  ;;  %1242 = vmatmul.mubr.msk.f32.vlgmr.msra.gmra.mrb[2].mxu1 %vm467_vm1, %v537_v20 }
 0x258   : > { %1253 = vmatprep.mubr.msk.f32.mxu1 %vm1611_vm0, %v1612_v7 }
 0x32a   : > { %v616_v22 = vpop.f32.mrb[2].mxu1 }
 0x32b   : > { %v1243_v23 = vpop.f32.mrb[3].mxu1  ;;  %1249 = vmatmul.mubr.msk.f32.vlgmr.msra.gmra.mrb[4].mxu0 %vm467_vm1, %v616_v22 }
 0x32c   : > { %1284 = vmatpush1.bf16.msra.mxu0 %v1268_v5  ;;  %1025 = vmatprep.mubr.f32.mxu0 %v1612_v7 }
 0x3fe   : > { %v701_v27 = vpop.f32.mrb[4].mxu0 }
 0x3ff   : > { %v702_v28 = vadd.f32 %v1192_v26, %v701_v27  ;;  %v1250_v29 = vpop.f32.mrb[5].mxu0 }
 0x401   : > { %1252 = vmatpush3.msk.msra.mxu1 %vm714_vm3, %v702_v28 }
 0x402   : > { %1254 = vmatmul.mubr.msk.f32.vlgmr.msra.gmra.mrb[4].mxu1 %vm710_vm4, %v463_v30 }
 0x403   : > { %1258 = vmatprep.mubr.msk.f32.mxu1 %vm467_vm1, %v465_v31 }
 0x4d5   : > { %v784_v33 = vpop.f32.mrb[4].mxu1 }
 0x4d6   : > { %v785_v34 = vadd.f32 %v784_v33, %v708_v32  ;;  %v1255_v35 = vpop.f32.mrb[5].mxu1 }
 0x4d8   : > { %1256 = vmatprep.subr.msk.mxu1 %vm467_vm1, %v785_v34 }
 0x4d9   : > { %1257 = vmatpush3.xpose.msk.msra.mxu1 %vm467_vm1, %v785_v34 }
 0x4da   : > { %1261 = vmatprep.subr.msk.mxu1 %vm714_vm3, %v459_v13 }
 0x4dc   : > { %1259 = vmatmul.mubr.msk.f32.vlgmr.msra.gmra.mrb[6].mxu1 %vm467_vm1, %v466_v36 }
 0x4dd   : > { %1262 = vmatpush3.msk.msra.mxu1 %vm714_vm3, %v459_v13 }
 0x5af   : > { %v1260_v37 = vpop.f32.mrb[6].mxu1 }
 0x5b0   : > { %v863_v38 = vpop.f32.mrb[7].mxu1 }
 0x5b1   : > { %1263 = vmatprep.mubr.msk.f32.mxu1 %vm710_vm4, %v863_v38 }
 0x5b2   : > { %1264 = vmatmul.mubr.msk.f32.vlgmr.msra.gmra.mrb[8].mxu1 %vm710_vm4, %v1260_v37 }
 0x685   : > { %v1265_v39 = vpop.f32.mrb[8].mxu1 }
 0x686   : > { %v946_v40 = vpop.f32.mrb[9].mxu1 }
 0x687   : > { %1204 = vmatmul.mubr.msk.f32.vlgmr.msra.gmra.mrb[6].mxu0 %vm467_vm1, %v946_v40 }
 0x688   : > { %1031 = vmatprep.mubr.f32.mxu0 %v1612_v7 }
 0x68b   : > { %1205 = vmatmul.mubr.msk.f32.gmra.mrb[8].mxu0 %vm467_vm1, %v1265_v39 }
 0x75a   : > { %v1027_v41 = vpop.f32.mrb[6].mxu0 }
 0x75b   : > { %v1038_v42 = vadd.f32 %v1027_v41, %v1902_v2  ;;  %v1029_v43 = vpop.f32.mrb[7].mxu0 }
 0x75c   : > { %v1039_v44 = vadd.f32 %v1029_v43, %v1898_v0 }
 0x75d   : > { %1042 = vst [vmem:[%s377_s16] sm:$0xff] %v1038_v42 }
 0x75e   : > { %1043 = vst [vmem:[%s377_s16 + $0x8] sm:$0xff] %v1039_v44  ;;  %v1033_v45 = vpop.f32.mrb[8].mxu0 }
 0x75f   : > { %v1040_v46 = vadd.f32 %v1033_v45, %v1906_v4  ;;  %v1035_v47 = vpop.f32.mrb[9].mxu0 }
 0x760   : > { %v1041_v48 = vadd.f32 %v1035_v47, %v1900_v1 }
 0x761   : > { %1044 = vst [vmem:[%s377_s16 + $0x10] sm:$0xff] %v1040_v46 }
 0x762   : > { %1045 = vst [vmem:[%s377_s16 + $0x18] sm:$0xff] %v1041_v48 }
 0x763   : > { %1538 = shalt.err (!%p1535_p13)
}
 0x764   : > { %s1539_s20 = scalar_lea.hbm %s1965_s19, 512  ;;  %s1543_s15 = scalar_lea.hbm %s2018_s8, 1024 }
 0x765   : > { %p1540_p9 = scmp.ne.s32.totalorder %s1965_s19, %s1539_s20  ;;  %p1544_p6 = scmp.lt.u32.totalorder %s1965_s19, %s2018_s8 }
 0x766   : > { %p1545_p4 = scmp.lt.u32.totalorder %s1543_s15, %s1539_s20  ;;  %p1547_p3 = scmp.lt.u32.totalorder %s1539_s20, %s1965_s19 }
 0x767   : > { %p1541_p0 = pnand %p1540_p9, %p1828_p10 }
 0x768   : > { %p1546_p8 = por %p1545_p4, %p1544_p6 }
 0x769   : > { %p1542_p11 = pneg %p1541_p0 }
 0x76a   : > { %p1548_p5 = por %p1547_p3, %p1546_p8 }
 0x76c   : > { %p1549_p7 = pnand %p1548_p5, %p1542_p11 }
 0x76e   : > { %1552 = shalt.err (!%p1549_p7)
}
 0x76f   : > { %s1615_s21 = smov 256   ;;  %s1616_s10 = smov 16  }
 0x770   : > { %1303 = dma.vmem_to_hbm [thread:$0]  (%p1828_p10), %s1959_s27, 512, %s1965_s19, %s1047_s9, %s1615_s21, %s1615_s21, %s1616_s10  }
 0x771 PF: > { %s2040_s11 = sld [smem:[#allocation16_spill]]  ;;  %s2041_s13 = sld [smem:[#allocation17_spill]] }
 0x772   : > { %p2043_p1 = scmp.ge.s32.totalorder %s1599_s30, 2 }
 0x777   : > { %s1075_s17 = sand.u32 1, %s2040_s11   ;;  %p2042_p12 = scmp.ne.s32.totalorder %s2041_s13, 0 }
 0x778   : > { %s1076_s22 = scalar_lea.sflag [#allocation4], %s1075_s17 }
 0x779   : > { %p1323_p2 = pnand %p2043_p1, %p2042_p12 }
 0x77b   : > { %1582 = dma.done.wait (!%p1323_p2), %s1076_s22, 512  }
 0x77c   : > { %1584 = vsyncadd (!%p1323_p2), %s1076_s22, 4294966784  ;;  %p23_p13 = scmp.ge.s32.totalorder %s1818_s26, 4   ;;  %s2044_s27 = smov %s1591_s28 }
 0x77d   : > { %s2045_s28 = smov %s1595_s29  ;;  %s2046_s29 = smov %s1834_s25 }
 0x77e   : > { %s2047_s30 = smov %s1818_s26  ;;  %25 = sbr.rel (!%p23_p13) target bundleno = 7 (0x7), region = 113 }
 0x785   :  { %1081 = vsyncpa [#allocation3], 1 }
 0x786   :  { %1083 = vsyncpa [#allocation3 + $0x1], 1 }
 0x787   :  { %1084 = vsyncpa [#allocation6], 1 }
 0x788   :  { %1085 = vsyncpa [#allocation9], 1 }
 0x789   :  { %1086 = vsyncpa [#allocation4], 1 }
 0x78a   :  { %1088 = vsyncpa [#allocation4 + $0x1], 1 }

</bundles_post_ra>
